<compile_context>
chip_gen: v5e
topology: v5e:2x2
jax: 0.10.0
libtpu: 0.0.40
codegen_flags: <defaults>
</compile_context>

<pallas_src>
import jax
import jax.numpy as jnp
from jax import lax
from jax.experimental import pallas as pl
from jax.experimental.pallas import tpu as pltpu


# ---------------------------------------------------------------------------
# Small helpers
# ---------------------------------------------------------------------------

def _round_up(x, m):
    return (x + m - 1) // m * m


def _pad_last(a, target):
    pad = target - a.shape[-1]
    if pad == 0:
        return a
    return jnp.pad(a, ((0, 0),) * (a.ndim - 1) + ((0, pad),))


_VMEM_LIMIT = None


def _vmem_limit_bytes():
    """Per-chip VMEM budget: ~3/4 of physical, capped at 100 MiB."""
    global _VMEM_LIMIT
    if _VMEM_LIMIT is None:
        try:
            phys = int(pltpu.get_tpu_info().vmem_capacity_bytes)
        except Exception:          # conservative fallback (v7x-sized)
            phys = 64 * 1024 * 1024
        _VMEM_LIMIT = int(min(phys * 3 // 4, 100 * 1024 * 1024))
    return _VMEM_LIMIT


def _cparams(grid_rank):
    return pltpu.CompilerParams(
        dimension_semantics=("parallel",) * grid_rank,
        vmem_limit_bytes=_vmem_limit_bytes(),
    )


def _max_tile(k, cout, itemsize, budget):
    """Largest spatial tile (lanes) for the im2col path that fits the budget."""
    per_lane = 2 * itemsize * (k + cout) + 8      # x + y, double-buffered
    cap = (budget // 2) // max(per_lane, 1)
    cap = (cap // 128) * 128
    return int(min(max(cap, 128), 2048))


def _choose_hw_tile(hw, max_tile):
    """Balanced lane tile: multiple of 128, minimal tail padding."""
    blocks = pl.cdiv(hw, 128)
    max_blocks = max(max_tile // 128, 1)
    nt = pl.cdiv(blocks, max_blocks)
    return 128 * pl.cdiv(blocks, nt)


def _sums_chunked(acc, chunk=512):
    """Per-channel (sum, sum-of-squares) over the lane axis, in lane chunks
    (bounds the squared temporaries to a few vregs)."""
    co, n = acc.shape
    s = jnp.zeros((co, 1), jnp.float32)
    ss = jnp.zeros((co, 1), jnp.float32)
    for c0 in range(0, n, chunk):
        blk = acc[:, c0:min(c0 + chunk, n)]
        s = s + jnp.sum(blk, axis=1, keepdims=True)
        ss = ss + jnp.sum(blk * blk, axis=1, keepdims=True)
    return s, ss


# ---------------------------------------------------------------------------
# Frame layout helpers (stride-1 3x3 convs)
#
# A "frame" stores pixel (i, j) of an HxW image at flat lane  B + i*(W+2) + j,
# with zeros everywhere else.  The two spare columns per row plus the leading /
# trailing margins ARE the conv zero padding, so the 9 taps of a 3x3 stride-1
# conv become 9 constant lane shifts of the frame.
# ---------------------------------------------------------------------------

def _frame_geometry(H, W):
    Wp = W + 2
    B = _round_up(Wp + 1, 128)          # leading margin (covers shift -(Wp+1))
    Lc = _round_up(H * Wp, 128)         # computed window length
    Lf = Lc + 2 * B                     # total frame length (trailing margin B)
    return Wp, B, Lc, Lf


def _build_frame(x_nchw, Wp, B, Lf, dtype):
    N, C, H, W = x_nchw.shape
    body = jnp.pad(x_nchw, ((0, 0), (0, 0), (0, 0), (0, Wp - W)))
    body = body.reshape(N, C, H * Wp)
    fr = jnp.pad(body, ((0, 0), (0, 0), (B, Lf - B - H * Wp)))
    return fr.astype(dtype)


def _frame_mask(H, W, Wp, B, Lf, dtype):
    row = jnp.concatenate(
        [jnp.ones((H, W), jnp.float32), jnp.zeros((H, Wp - W), jnp.float32)],
        axis=1).reshape(H * Wp)
    m = jnp.pad(row, (B, Lf - B - H * Wp))
    return m.reshape(1, Lf).astype(dtype)


def _extract_frame(fr, H, W, Wp, B):
    N, C, _ = fr.shape
    return fr[:, :, B:B + H * Wp].reshape(N, C, H, Wp)[:, :, :, :W]


def _tap_major(w_oihw):
    """OIHW conv weight -> (Cout, 9*Cin) with tap-major ordering t*Cin + ci."""
    co, ci, kh, kw = w_oihw.shape
    return jnp.transpose(w_oihw, (0, 2, 3, 1)).reshape(co, kh * kw * ci)


# ---------------------------------------------------------------------------
# Pallas kernels
# ---------------------------------------------------------------------------

def _make_frame_conv_kernel(shifts, B, Lc, cin, prologue):
    """3x3 stride-1 conv on frame layout, + partial BN stats.

    Inputs (prologue variant adds s_ref/b_ref of the *previous* BN):
      x_ref: (1, Cin, Lf)   frame (bf16/f32)
      w_ref: (Cout, 9*Cin)  tap-major folded weights
      m_ref: (1, Lf)        0/1 valid-pixel mask
      y_ref: (1, Cout, Lf)  output frame (masked conv result)
      st_ref:(1, Cout, 2)   per-sample [sum, sum_sq] over valid pixels
    """

    def body(x_ref, w_ref, m_ref, y_ref, st_ref, s_ref=None, b_ref=None):
        cout = w_ref.shape[0]
        Lf = y_ref.shape[-1]
        xf = x_ref[0]                                        # (Cin, Lf)
        if prologue:
            # bn1-apply + ReLU fused here; mask restores zero padding.
            h = jnp.maximum(xf.astype(jnp.float32) * s_ref[...] + b_ref[...],
                            0.0)
            xf = (h * m_ref[...].astype(jnp.float32)).astype(x_ref.dtype)
        acc = None
        for t, s in enumerate(shifts):                       # 9 taps, unrolled
            win = xf[:, B + s:B + s + Lc]                    # (Cin, Lc)
            d = jnp.dot(w_ref[:, t * cin:(t + 1) * cin], win,
                        preferred_element_type=jnp.float32)
            acc = d if acc is None else acc + d
        acc = acc * m_ref[:, B:B + Lc].astype(jnp.float32)   # zero non-pixels
        su, ss = _sums_chunked(acc)
        st_ref[0, :, 0:1] = su
        st_ref[0, :, 1:2] = ss
        y_ref[0, :, B:B + Lc] = acc.astype(y_ref.dtype)
        y_ref[0, :, :B] = jnp.zeros((cout, B), y_ref.dtype)
        y_ref[0, :, B + Lc:] = jnp.zeros((cout, Lf - B - Lc), y_ref.dtype)

    if prologue:
        def kernel(x_ref, w_ref, m_ref, s_ref, b_ref, y_ref, st_ref):
            body(x_ref, w_ref, m_ref, y_ref, st_ref, s_ref, b_ref)
    else:
        def kernel(x_ref, w_ref, m_ref, y_ref, st_ref):
            body(x_ref, w_ref, m_ref, y_ref, st_ref)
    return kernel


def _frame_bn_add_relu_kernel(y_ref, r_ref, s_ref, b_ref, o_ref):
    """relu(bn2(y) + resid) on frame layout (invalid lanes dropped later)."""
    o_ref[0] = jnp.maximum(
        y_ref[0].astype(jnp.float32) * s_ref[...] + b_ref[...]
        + r_ref[0].astype(jnp.float32), 0.0)


def _conv_stats_kernel(x_ref, w_ref, y_ref, st_ref):
    """Folded-tap (im2col) matmul + partial BN stats (stride-2 convs)."""
    acc = jnp.dot(w_ref[...], x_ref[0], preferred_element_type=jnp.float32)
    y_ref[0] = acc.astype(y_ref.dtype)
    su, ss = _sums_chunked(acc)
    st_ref[0, 0, :, 0:1] = su
    st_ref[0, 0, :, 1:2] = ss


def _bn_bn_add_relu_kernel(y_ref, r_ref, sy_ref, by_ref, sr_ref, br_ref, o_ref):
    """relu(bn2(y) + bn_d(r)) on compact (N, C, HW) layout."""
    y = y_ref[...].astype(jnp.float32)
    r = r_ref[...].astype(jnp.float32)
    o_ref[...] = jnp.maximum(
        y * sy_ref[...] + by_ref[...] + r * sr_ref[...] + br_ref[...], 0.0)


# ---------------------------------------------------------------------------
# Pallas wrappers
# ---------------------------------------------------------------------------

def frame_conv3x3(x_frame, w_tap, mask, geom, out_dtype,
                  prev_scale=None, prev_bias=None):
    """3x3 stride-1 conv on a frame tensor. Returns (y_frame, stats)."""
    Wp, B, Lc, Lf = geom
    N, Cin, _ = x_frame.shape
    Cout, Kt = w_tap.shape
    shifts = tuple((dy - 1) * Wp + (dx - 1) for dy in range(3) for dx in range(3))
    prologue = prev_scale is not None
    kernel = _make_frame_conv_kernel(shifts, B, Lc, Cin, prologue)

    in_specs = [pl.BlockSpec((1, Cin, Lf), lambda n: (n, 0, 0)),
                pl.BlockSpec((Cout, Kt), lambda n: (0, 0)),
                pl.BlockSpec((1, Lf), lambda n: (0, 0))]
    args = [x_frame, w_tap, mask]
    if prologue:
        in_specs += [pl.BlockSpec((Cin, 1), lambda n: (0, 0)),
                     pl.BlockSpec((Cin, 1), lambda n: (0, 0))]
        args += [prev_scale.reshape(Cin, 1).astype(jnp.float32),
                 prev_bias.reshape(Cin, 1).astype(jnp.float32)]

    return pl.pallas_call(
        kernel,
        out_shape=(jax.ShapeDtypeStruct((N, Cout, Lf), out_dtype),
                   jax.ShapeDtypeStruct((N, Cout, 2), jnp.float32)),
        grid=(N,),
        in_specs=in_specs,
        out_specs=(pl.BlockSpec((1, Cout, Lf), lambda n: (n, 0, 0)),
                   pl.BlockSpec((1, Cout, 2), lambda n: (n, 0, 0))),
        compiler_params=_cparams(1),
    )(*args)


def frame_bn_add_relu(y_frame, r_frame, scale, bias):
    N, C, Lf = y_frame.shape
    return pl.pallas_call(
        _frame_bn_add_relu_kernel,
        out_shape=jax.ShapeDtypeStruct((N, C, Lf), jnp.float32),
        grid=(N,),
        in_specs=[pl.BlockSpec((1, C, Lf), lambda n: (n, 0, 0)),
                  pl.BlockSpec((1, C, Lf), lambda n: (n, 0, 0)),
                  pl.BlockSpec((C, 1), lambda n: (0, 0)),
                  pl.BlockSpec((C, 1), lambda n: (0, 0))],
        out_specs=pl.BlockSpec((1, C, Lf), lambda n: (n, 0, 0)),
        compiler_params=_cparams(1),
    )(y_frame, r_frame,
      scale.reshape(C, 1).astype(jnp.float32),
      bias.reshape(C, 1).astype(jnp.float32))


def conv_fold_matmul(x_taps, w2d, thw, mm_dtype, out_dtype):
    """x_taps: (N, K, HWp), HWp % thw == 0;  w2d: (Cout, K)."""
    N, K, HWp = x_taps.shape
    Cout = w2d.shape[0]
    nt = HWp // thw
    x_taps = x_taps.astype(mm_dtype)
    w2d = w2d.astype(mm_dtype)
    return pl.pallas_call(
        _conv_stats_kernel,
        out_shape=(jax.ShapeDtypeStruct((N, Cout, HWp), out_dtype),
                   jax.ShapeDtypeStruct((N, nt, Cout, 2), jnp.float32)),
        grid=(N, nt),
        in_specs=[pl.BlockSpec((1, K, thw), lambda n, t: (n, 0, t)),
                  pl.BlockSpec((Cout, K), lambda n, t: (0, 0))],
        out_specs=(pl.BlockSpec((1, Cout, thw), lambda n, t: (n, 0, t)),
                   pl.BlockSpec((1, 1, Cout, 2), lambda n, t: (n, t, 0, 0))),
        compiler_params=_cparams(2),
    )(x_taps, w2d)


def bn_bn_add_relu(y, resid, s_y, b_y, s_r, b_r, thw):
    N, C, HWp = y.shape
    nt = HWp // thw
    col = lambda v: v.reshape(1, C, 1).astype(jnp.float32)
    return pl.pallas_call(
        _bn_bn_add_relu_kernel,
        out_shape=jax.ShapeDtypeStruct((N, C, HWp), jnp.float32),
        grid=(N, nt),
        in_specs=[pl.BlockSpec((1, C, thw), lambda n, t: (n, 0, t)),
                  pl.BlockSpec((1, C, thw), lambda n, t: (n, 0, t)),
                  pl.BlockSpec((1, C, 1), lambda n, t: (0, 0, 0)),
                  pl.BlockSpec((1, C, 1), lambda n, t: (0, 0, 0)),
                  pl.BlockSpec((1, C, 1), lambda n, t: (0, 0, 0)),
                  pl.BlockSpec((1, C, 1), lambda n, t: (0, 0, 0))],
        out_specs=pl.BlockSpec((1, C, thw), lambda n, t: (n, 0, t)),
        compiler_params=_cparams(2),
    )(y, resid, col(s_y), col(b_y), col(s_r), col(b_r))


# ---------------------------------------------------------------------------
# Glue: im2col (stride-2 only), BN finishing, parameter setup
# ---------------------------------------------------------------------------

def _extract_taps_nchw(x, k, stride, pad):
    """Folded im2col in NCHW: (N, C, H, W) -> (N, C*k*k, Ho*Wo), Ho, Wo."""
    N, C, H, W = x.shape
    Ho = (H + 2 * pad - k) // stride + 1
    Wo = (W + 2 * pad - k) // stride + 1
    xp = jnp.pad(x, ((0, 0), (0, 0), (pad, pad), (pad, pad)))
    taps = []
    for dy in range(k):
        for dx in range(k):
            taps.append(
                xp[:, :, dy:dy + stride * (Ho - 1) + 1:stride,
                         dx:dx + stride * (Wo - 1) + 1:stride
                   ].reshape(N, C, Ho * Wo))
    xt = jnp.stack(taps, axis=2).reshape(N, C * k * k, Ho * Wo)
    return xt, Ho, Wo


def _finish_bn(stats, count, gamma, beta, eps=1e-5):
    """Finish training-mode BN (batch mean, biased var) from per-block partials.
    Masked / zero-padded positions contribute exactly zero, so dividing by the
    true element count is exact.  Variance is clamped >= 0."""
    tot = stats.reshape(-1, stats.shape[-2], 2).sum(axis=0)   # (Cout, 2)
    mean = tot[:, 0] / count
    var = jnp.maximum(tot[:, 1] / count - mean * mean, 0.0)
    scale = gamma * lax.rsqrt(var + eps)
    bias = beta - mean * scale
    return scale, bias


def init_params(key, in_features, out_features):
    ks = jax.random.split(key, 3)
    p = {}
    p["w1"] = jax.random.normal(ks[0], (out_features, in_features, 3, 3),
                                jnp.float32) * (2.0 / (9 * in_features)) ** 0.5
    p["gamma1"] = jnp.ones((out_features,), jnp.float32)
    p["beta1"] = jnp.zeros((out_features,), jnp.float32)
    p["w2"] = jax.random.normal(ks[1], (out_features, out_features, 3, 3),
                                jnp.float32) * (2.0 / (9 * out_features)) ** 0.5
    p["gamma2"] = jnp.ones((out_features,), jnp.float32)
    p["beta2"] = jnp.zeros((out_features,), jnp.float32)
    if in_features != out_features:
        p["wd"] = jax.random.normal(ks[2], (out_features, in_features, 1, 1),
                                    jnp.float32) * (2.0 / in_features) ** 0.5
        p["gammad"] = jnp.ones((out_features,), jnp.float32)
        p["betad"] = jnp.zeros((out_features,), jnp.float32)
    return p


def basic_block_forward(x_nchw, params, in_features, out_features,
                        eps=1e-5, mm_dtype=jnp.bfloat16):
    if in_features != out_features:
        if out_features / in_features != 2.0:
            raise ValueError("The number of output features is at most two "
                             "times the number of input features!")
        stride = 2
    else:
        stride = 1

    x = x_nchw.astype(jnp.float32)
    N, _, H, W = x.shape
    C = out_features
    w2_tap = _tap_major(params["w2"]).astype(mm_dtype)

    if stride == 1:
        # ------------------- identity block: all frame-layout ---------------
        Wp, B, Lc, Lf = _frame_geometry(H, W)
        geom = (Wp, B, Lc, Lf)
        mask = _frame_mask(H, W, Wp, B, Lf, mm_dtype)
        xf = _build_frame(x, Wp, B, Lf, mm_dtype)            # also the residual

        w1_tap = _tap_major(params["w1"]).astype(mm_dtype)
        y1f, st1 = frame_conv3x3(xf, w1_tap, mask, geom, out_dtype=mm_dtype)
        s1, b1 = _finish_bn(st1, N * H * W, params["gamma1"], params["beta1"], eps)

        # conv2 with bn1-apply + ReLU fused as an in-kernel prologue.
        y2f, st2 = frame_conv3x3(y1f, w2_tap, mask, geom, out_dtype=mm_dtype,
                                 prev_scale=s1, prev_bias=b1)
        s2, b2 = _finish_bn(st2, N * H * W, params["gamma2"], params["beta2"], eps)

        outf = frame_bn_add_relu(y2f, xf, s2, b2)
        return _extract_frame(outf, H, W, Wp, B)             # (N, C, H, W) f32

    # ----------------------- downsample block (stride 2) --------------------
    # conv1 (3x3, stride 2) via folded-tap matmul.
    xt1, Ho, Wo = _extract_taps_nchw(x, 3, 2, 1)
    hw = Ho * Wo
    budget = _vmem_limit_bytes()
    itemsize = jnp.dtype(mm_dtype).itemsize
    thw = _choose_hw_tile(hw, _max_tile(xt1.shape[1], C, itemsize, budget))
    hwp = _round_up(hw, thw)
    y1c, st1 = conv_fold_matmul(_pad_last(xt1, hwp),
                                params["w1"].reshape(C, -1), thw,
                                mm_dtype, mm_dtype)
    s1, b1 = _finish_bn(st1, N * hw, params["gamma1"], params["beta1"], eps)

    # conv2 (3x3, stride 1) via frame layout at (Ho, Wo), bn1+relu fused.
    Wp, B, Lc, Lf = _frame_geometry(Ho, Wo)
    mask = _frame_mask(Ho, Wo, Wp, B, Lf, mm_dtype)
    y1f = _build_frame(y1c[:, :, :hw].reshape(N, C, Ho, Wo), Wp, B, Lf, mm_dtype)
    y2f, st2 = frame_conv3x3(y1f, w2_tap, mask, (Wp, B, Lc, Lf),
                             out_dtype=mm_dtype, prev_scale=s1, prev_bias=b1)
    s2, b2 = _finish_bn(st2, N * hw, params["gamma2"], params["beta2"], eps)

    # downsample 1x1 stride-2 conv.
    xtd, _, _ = _extract_taps_nchw(x, 1, 2, 0)
    yd, std_ = conv_fold_matmul(_pad_last(xtd, hwp),
                                params["wd"].reshape(C, -1), thw,
                                mm_dtype, mm_dtype)
    sd, bd = _finish_bn(std_, N * hw, params["gammad"], params["betad"], eps)

    # fused epilogue on compact layout.
    y2c = _pad_last(_extract_frame(y2f, Ho, Wo, Wp, B).reshape(N, C, hw), hwp)
    out = bn_bn_add_relu(y2c, yd, s2, b2, sd, bd, thw)
    return out[:, :, :hw].reshape(N, C, Ho, Wo)              # NCHW, like PyTorch


# ---------------------------------------------------------------------------
# Pure-JAX reference (mirrors the PyTorch forward) for correctness checking
# ---------------------------------------------------------------------------

def reference_forward(x_nchw, params, cin, cout, eps=1e-5):
    x = x_nchw.astype(jnp.float32)
    stride = 2 if cin != cout else 1
    hi = lax.Precision.HIGHEST

    def conv(v, w, s, pad):
        return lax.conv_general_dilated(
            v, w, (s, s), ((pad, pad), (pad, pad)),
            dimension_numbers=("NCHW", "OIHW", "NCHW"), precision=hi)

    def bn(v, g, b):
        m = v.mean(axis=(0, 2, 3), keepdims=True)
        var = v.var(axis=(0, 2, 3), keepdims=True)
        return ((v - m) / jnp.sqrt(var + eps) * g[None, :, None, None]
                + b[None, :, None, None])

    y1 = conv(x, params["w1"], stride, 1)
    h = jax.nn.relu(bn(y1, params["gamma1"], params["beta1"]))
    y2 = bn(conv(h, params["w2"], 1, 1), params["gamma2"], params["beta2"])
    if cin != cout:
        ident = bn(conv(x, params["wd"], 2, 0),
                   params["gammad"], params["betad"])
    else:
        ident = x
    return jax.nn.relu(y2 + ident)


# ---------------------------------------------------------------------------

if __name__ == "__main__":
    key = jax.random.PRNGKey(0)
    kx, kp1, kp2 = jax.random.split(key, 3)

    N, Cin, H, W = 2, 4, 16, 16
    x = jax.random.normal(kx, (N, Cin, H, W), jnp.float32)

    # Case 1: downsample branch (in != out, stride 2), bf16 intermediates.
    Cout = 8
    params = init_params(kp1, Cin, Cout)
    fwd_ds = jax.jit(lambda xv, pv: basic_block_forward(xv, pv, Cin, Cout))
    out = jax.block_until_ready(fwd_ds(x, params))
    assert out.shape == (N, Cout, H // 2, W // 2), out.shape
    ref = reference_forward(x, params, Cin, Cout)
    assert jnp.allclose(out, ref, atol=3e-2, rtol=3e-2), \
        float(jnp.max(jnp.abs(out - ref)))

    # Case 1b: downsample branch with f32 frames/matmuls (tight check).
    fwd_ds32 = jax.jit(lambda xv, pv: basic_block_forward(
        xv, pv, Cin, Cout, mm_dtype=jnp.float32))
    out32 = jax.block_until_ready(fwd_ds32(x, params))
    assert jnp.allclose(out32, ref, atol=1e-2, rtol=1e-2), \
        float(jnp.max(jnp.abs(out32 - ref)))

    # Case 2: identity branch (in == out, stride 1), frame-conv path, bf16.
    params_id = init_params(kp2, Cin, Cin)
    fwd_id = jax.jit(lambda xv, pv: basic_block_forward(xv, pv, Cin, Cin))
    out_id = jax.block_until_ready(fwd_id(x, params_id))
    assert out_id.shape == (N, Cin, H, W), out_id.shape
    ref_id = reference_forward(x, params_id, Cin, Cin)
    assert jnp.allclose(out_id, ref_id, atol=3e-2, rtol=3e-2), \
        float(jnp.max(jnp.abs(out_id - ref_id)))

    # Case 2b: identity branch with f32 frames/matmuls (tight check).
    fwd_id32 = jax.jit(lambda xv, pv: basic_block_forward(
        xv, pv, Cin, Cin, mm_dtype=jnp.float32))
    out_id32 = jax.block_until_ready(fwd_id32(x, params_id))
    assert jnp.allclose(out_id32, ref_id, atol=1e-2, rtol=1e-2), \
        float(jnp.max(jnp.abs(out_id32 - ref_id)))

    print("KERNEL_OK")
</pallas_src>

<mosaic_0001>
module attributes {stable_mosaic.version = 11 : i64} {
  func.func @_conv_stats_kernel(%arg0: i32, %arg1: i32, %arg2: memref<1x36x128xbf16, #tpu.memory_space<vmem>>, %arg3: memref<8x36xbf16, #tpu.memory_space<vmem>>, %arg4: memref<1x8x128xbf16, #tpu.memory_space<vmem>>, %arg5: memref<1x1x8x2xf32, #tpu.memory_space<vmem>>) attributes {dimension_semantics = [#tpu.dimension_semantics<parallel>, #tpu.dimension_semantics<parallel>], iteration_bounds = array<i64: 2, 1>, scalar_prefetch = 0 : i64, scratch_operands = 0 : i64, tpu.core_type = #tpu.core_type<tc>, window_params = [{transform_indices = @transform_0, window_bounds = array<i64: 1, 36, 128>}, {pipeline_mode = #tpu.pipeline_mode<synchronous>, transform_indices = @transform_1, window_bounds = array<i64: 8, 36>}, {transform_indices = @transform_2, window_bounds = array<i64: 1, 8, 128>}, {transform_indices = @transform_3, window_bounds = array<i64: 1, 1, 8, 2>}]} {
    %c0 = arith.constant 0 : index
    %c0_0 = arith.constant 0 : index
    %0 = vector.load %arg3[%c0, %c0_0] : memref<8x36xbf16, #tpu.memory_space<vmem>>, vector<8x36xbf16>
    %c0_1 = arith.constant 0 : index
    %c0_2 = arith.constant 0 : index
    %c0_3 = arith.constant 0 : index
    %1 = vector.load %arg2[%c0_1, %c0_2, %c0_3] : memref<1x36x128xbf16, #tpu.memory_space<vmem>>, vector<1x36x128xbf16>
    %2 = vector.shape_cast %1 : vector<1x36x128xbf16> to vector<36x128xbf16>
    %cst = arith.constant dense<0.000000e+00> : vector<8x128xf32>
    %3 = tpu.matmul %0, %2, %cst {dimension_numbers = #tpu.dot_dimension_numbers<[1], [0], [0], [1], [0, 0, 1, 1], [], []>} : vector<8x36xbf16>, vector<36x128xbf16>, vector<8x128xf32> -> vector<8x128xf32>
    %4 = arith.truncf %3 : vector<8x128xf32> to vector<8x128xbf16>
    %c0_4 = arith.constant 0 : index
    %c0_5 = arith.constant 0 : index
    %c0_6 = arith.constant 0 : index
    %5 = vector.load %arg4[%c0_4, %c0_5, %c0_6] : memref<1x8x128xbf16, #tpu.memory_space<vmem>>, vector<1x8x128xbf16>
    %6 = vector.shape_cast %5 : vector<1x8x128xbf16> to vector<8x128xbf16>
    %7 = vector.shape_cast %4 : vector<8x128xbf16> to vector<1x8x128xbf16>
    tpu.vector_store %arg4[%c0_4, %c0_5, %c0_6], %7 {strides = array<i32>} : memref<1x8x128xbf16, #tpu.memory_space<vmem>>, vector<1x8x128xbf16>,
    %cst_7 = arith.constant 0.000000e+00 : f32
    %8 = vector.broadcast %cst_7 : f32 to vector<8x1xf32>
    %cst_8 = arith.constant 0.000000e+00 : f32
    %9 = vector.broadcast %cst_8 : f32 to vector<8x1xf32>
    %cst_9 = arith.constant dense<0.000000e+00> : vector<8xf32>
    %10 = vector.multi_reduction <add>, %3, %cst_9 [1] : vector<8x128xf32> to vector<8xf32>
    %11 = vector.shape_cast %10 : vector<8xf32> to vector<8x1xf32>
    %12 = arith.addf %8, %11 : vector<8x1xf32>
    %13 = arith.mulf %3, %3 : vector<8x128xf32>
    %cst_10 = arith.constant dense<0.000000e+00> : vector<8xf32>
    %14 = vector.multi_reduction <add>, %13, %cst_10 [1] : vector<8x128xf32> to vector<8xf32>
    %15 = vector.shape_cast %14 : vector<8xf32> to vector<8x1xf32>
    %16 = arith.addf %9, %15 : vector<8x1xf32>
    %c0_11 = arith.constant 0 : index
    %c0_12 = arith.constant 0 : index
    %c0_13 = arith.constant 0 : index
    %c0_14 = arith.constant 0 : index
    %17 = vector.load %arg5[%c0_11, %c0_12, %c0_13, %c0_14] : memref<1x1x8x2xf32, #tpu.memory_space<vmem>>, vector<1x1x8x1xf32>
    %18 = vector.shape_cast %17 : vector<1x1x8x1xf32> to vector<8x1xf32>
    %19 = vector.shape_cast %12 : vector<8x1xf32> to vector<1x1x8x1xf32>
    tpu.vector_store %arg5[%c0_11, %c0_12, %c0_13, %c0_14], %19 {strides = array<i32>} : memref<1x1x8x2xf32, #tpu.memory_space<vmem>>, vector<1x1x8x1xf32>,
    %c0_15 = arith.constant 0 : index
    %c0_16 = arith.constant 0 : index
    %c0_17 = arith.constant 0 : index
    %c1 = arith.constant 1 : index
    %20 = vector.load %arg5[%c0_15, %c0_16, %c0_17, %c1] : memref<1x1x8x2xf32, #tpu.memory_space<vmem>>, vector<1x1x8x1xf32>
    %21 = vector.shape_cast %20 : vector<1x1x8x1xf32> to vector<8x1xf32>
    %22 = vector.shape_cast %16 : vector<8x1xf32> to vector<1x1x8x1xf32>
    tpu.vector_store %arg5[%c0_15, %c0_16, %c0_17, %c1], %22 {strides = array<i32>} : memref<1x1x8x2xf32, #tpu.memory_space<vmem>>, vector<1x1x8x1xf32>,
    return
  }
  func.func @transform_0(%arg0: i32, %arg1: i32) -> (i32, i32, i32) {
    %c0_i32 = arith.constant 0 : i32
    %c0_i32_0 = arith.constant 0 : i32
    return %arg0, %c0_i32, %arg1 : i32, i32, i32
  }
  func.func @transform_1(%arg0: i32, %arg1: i32) -> (i32, i32) {
    %c0_i32 = arith.constant 0 : i32
    %c0_i32_0 = arith.constant 0 : i32
    %c0_i32_1 = arith.constant 0 : i32
    return %c0_i32, %c0_i32_0 : i32, i32
  }
  func.func @transform_2(%arg0: i32, %arg1: i32) -> (i32, i32, i32) {
    %c0_i32 = arith.constant 0 : i32
    %c0_i32_0 = arith.constant 0 : i32
    return %arg0, %c0_i32, %arg1 : i32, i32, i32
  }
  func.func @transform_3(%arg0: i32, %arg1: i32) -> (i32, i32, i32, i32) {
    %c0_i32 = arith.constant 0 : i32
    %c0_i32_0 = arith.constant 0 : i32
    %c0_i32_1 = arith.constant 0 : i32
    return %arg0, %arg1, %c0_i32, %c0_i32_0 : i32, i32, i32, i32
  }
}

module attributes {stable_mosaic.version = 11 : i64} {
  func.func @kernel(%arg0: i32, %arg1: memref<1x8x384xbf16, #tpu.memory_space<vmem>>, %arg2: memref<8x72xbf16, #tpu.memory_space<vmem>>, %arg3: memref<1x384xbf16, #tpu.memory_space<vmem>>, %arg4: memref<8x1xf32, #tpu.memory_space<vmem>>, %arg5: memref<8x1xf32, #tpu.memory_space<vmem>>, %arg6: memref<1x8x384xbf16, #tpu.memory_space<vmem>>, %arg7: memref<1x8x2xf32, #tpu.memory_space<vmem>>) attributes {dimension_semantics = [#tpu.dimension_semantics<parallel>], iteration_bounds = array<i64: 2>, scalar_prefetch = 0 : i64, scratch_operands = 0 : i64, tpu.core_type = #tpu.core_type<tc>, window_params = [{transform_indices = @transform_0, window_bounds = array<i64: 1, 8, 384>}, {pipeline_mode = #tpu.pipeline_mode<synchronous>, transform_indices = @transform_1, window_bounds = array<i64: 8, 72>}, {pipeline_mode = #tpu.pipeline_mode<synchronous>, transform_indices = @transform_2, window_bounds = array<i64: 1, 384>}, {pipeline_mode = #tpu.pipeline_mode<synchronous>, transform_indices = @transform_3, window_bounds = array<i64: 8, 1>}, {pipeline_mode = #tpu.pipeline_mode<synchronous>, transform_indices = @transform_4, window_bounds = array<i64: 8, 1>}, {transform_indices = @transform_5, window_bounds = array<i64: 1, 8, 384>}, {transform_indices = @transform_6, window_bounds = array<i64: 1, 8, 2>}]} {
    %c0 = arith.constant 0 : index
    %c0_0 = arith.constant 0 : index
    %c0_1 = arith.constant 0 : index
    %0 = vector.load %arg1[%c0, %c0_0, %c0_1] : memref<1x8x384xbf16, #tpu.memory_space<vmem>>, vector<1x8x384xbf16>
    %1 = vector.shape_cast %0 : vector<1x8x384xbf16> to vector<8x384xbf16>
    %2 = arith.extf %1 : vector<8x384xbf16> to vector<8x384xf32>
    %c0_2 = arith.constant 0 : index
    %c0_3 = arith.constant 0 : index
    %3 = vector.load %arg4[%c0_2, %c0_3] : memref<8x1xf32, #tpu.memory_space<vmem>>, vector<8x1xf32>
    %4 = vector.broadcast %3 : vector<8x1xf32> to vector<8x384xf32>
    %5 = arith.mulf %2, %4 : vector<8x384xf32>
    %c0_4 = arith.constant 0 : index
    %c0_5 = arith.constant 0 : index
    %6 = vector.load %arg5[%c0_4, %c0_5] : memref<8x1xf32, #tpu.memory_space<vmem>>, vector<8x1xf32>
    %7 = vector.broadcast %6 : vector<8x1xf32> to vector<8x384xf32>
    %8 = arith.addf %5, %7 : vector<8x384xf32>
    %cst = arith.constant 0.000000e+00 : f32
    %9 = vector.broadcast %cst : f32 to vector<8x384xf32>
    %10 = arith.maximumf %8, %9 : vector<8x384xf32>
    %c0_6 = arith.constant 0 : index
    %c0_7 = arith.constant 0 : index
    %11 = vector.load %arg3[%c0_6, %c0_7] : memref<1x384xbf16, #tpu.memory_space<vmem>>, vector<1x384xbf16>
    %12 = arith.extf %11 : vector<1x384xbf16> to vector<1x384xf32>
    %13 = vector.broadcast %12 : vector<1x384xf32> to vector<8x384xf32>
    %14 = arith.mulf %10, %13 : vector<8x384xf32>
    %15 = arith.truncf %14 : vector<8x384xf32> to vector<8x384xbf16>
    %16 = vector.extract_strided_slice %15 {offsets = [0, 117], sizes = [8, 128], strides = [1, 1]} : vector<8x384xbf16> to vector<8x128xbf16>
    %c0_8 = arith.constant 0 : index
    %c0_9 = arith.constant 0 : index
    %17 = vector.load %arg2[%c0_8, %c0_9] : memref<8x72xbf16, #tpu.memory_space<vmem>>, vector<8x8xbf16>
    %cst_10 = arith.constant dense<0.000000e+00> : vector<8x128xf32>
    %18 = tpu.matmul %17, %16, %cst_10 {dimension_numbers = #tpu.dot_dimension_numbers<[1], [0], [0], [1], [0, 0, 1, 1], [], []>} : vector<8x8xbf16>, vector<8x128xbf16>, vector<8x128xf32> -> vector<8x128xf32>
    %19 = vector.extract_strided_slice %15 {offsets = [0, 118], sizes = [8, 128], strides = [1, 1]} : vector<8x384xbf16> to vector<8x128xbf16>
    %c0_11 = arith.constant 0 : index
    %c8 = arith.constant 8 : index
    %20 = vector.load %arg2[%c0_11, %c8] : memref<8x72xbf16, #tpu.memory_space<vmem>>, vector<8x8xbf16>
    %cst_12 = arith.constant dense<0.000000e+00> : vector<8x128xf32>
    %21 = tpu.matmul %20, %19, %cst_12 {dimension_numbers = #tpu.dot_dimension_numbers<[1], [0], [0], [1], [0, 0, 1, 1], [], []>} : vector<8x8xbf16>, vector<8x128xbf16>, vector<8x128xf32> -> vector<8x128xf32>
    %22 = arith.addf %18, %21 : vector<8x128xf32>
    %23 = vector.extract_strided_slice %15 {offsets = [0, 119], sizes = [8, 128], strides = [1, 1]} : vector<8x384xbf16> to vector<8x128xbf16>
    %c0_13 = arith.constant 0 : index
    %c16 = arith.constant 16 : index
    %24 = vector.load %arg2[%c0_13, %c16] : memref<8x72xbf16, #tpu.memory_space<vmem>>, vector<8x8xbf16>
    %cst_14 = arith.constant dense<0.000000e+00> : vector<8x128xf32>
    %25 = tpu.matmul %24, %23, %cst_14 {dimension_numbers = #tpu.dot_dimension_numbers<[1], [0], [0], [1], [0, 0, 1, 1], [], []>} : vector<8x8xbf16>, vector<8x128xbf16>, vector<8x128xf32> -> vector<8x128xf32>
    %26 = arith.addf %22, %25 : vector<8x128xf32>
    %27 = vector.extract_strided_slice %15 {offsets = [0, 127], sizes = [8, 128], strides = [1, 1]} : vector<8x384xbf16> to vector<8x128xbf16>
    %c0_15 = arith.constant 0 : index
    %c24 = arith.constant 24 : index
    %28 = vector.load %arg2[%c0_15, %c24] : memref<8x72xbf16, #tpu.memory_space<vmem>>, vector<8x8xbf16>
    %cst_16 = arith.constant dense<0.000000e+00> : vector<8x128xf32>
    %29 = tpu.matmul %28, %27, %cst_16 {dimension_numbers = #tpu.dot_dimension_numbers<[1], [0], [0], [1], [0, 0, 1, 1], [], []>} : vector<8x8xbf16>, vector<8x128xbf16>, vector<8x128xf32> -> vector<8x128xf32>
    %30 = arith.addf %26, %29 : vector<8x128xf32>
    %31 = vector.extract_strided_slice %15 {offsets = [0, 128], sizes = [8, 128], strides = [1, 1]} : vector<8x384xbf16> to vector<8x128xbf16>
    %c0_17 = arith.constant 0 : index
    %c32 = arith.constant 32 : index
    %32 = vector.load %arg2[%c0_17, %c32] : memref<8x72xbf16, #tpu.memory_space<vmem>>, vector<8x8xbf16>
    %cst_18 = arith.constant dense<0.000000e+00> : vector<8x128xf32>
    %33 = tpu.matmul %32, %31, %cst_18 {dimension_numbers = #tpu.dot_dimension_numbers<[1], [0], [0], [1], [0, 0, 1, 1], [], []>} : vector<8x8xbf16>, vector<8x128xbf16>, vector<8x128xf32> -> vector<8x128xf32>
    %34 = arith.addf %30, %33 : vector<8x128xf32>
    %35 = vector.extract_strided_slice %15 {offsets = [0, 129], sizes = [8, 128], strides = [1, 1]} : vector<8x384xbf16> to vector<8x128xbf16>
    %c0_19 = arith.constant 0 : index
    %c40 = arith.constant 40 : index
    %36 = vector.load %arg2[%c0_19, %c40] : memref<8x72xbf16, #tpu.memory_space<vmem>>, vector<8x8xbf16>
    %cst_20 = arith.constant dense<0.000000e+00> : vector<8x128xf32>
    %37 = tpu.matmul %36, %35, %cst_20 {dimension_numbers = #tpu.dot_dimension_numbers<[1], [0], [0], [1], [0, 0, 1, 1], [], []>} : vector<8x8xbf16>, vector<8x128xbf16>, vector<8x128xf32> -> vector<8x128xf32>
    %38 = arith.addf %34, %37 : vector<8x128xf32>
    %39 = vector.extract_strided_slice %15 {offsets = [0, 137], sizes = [8, 128], strides = [1, 1]} : vector<8x384xbf16> to vector<8x128xbf16>
    %c0_21 = arith.constant 0 : index
    %c48 = arith.constant 48 : index
    %40 = vector.load %arg2[%c0_21, %c48] : memref<8x72xbf16, #tpu.memory_space<vmem>>, vector<8x8xbf16>
    %cst_22 = arith.constant dense<0.000000e+00> : vector<8x128xf32>
    %41 = tpu.matmul %40, %39, %cst_22 {dimension_numbers = #tpu.dot_dimension_numbers<[1], [0], [0], [1], [0, 0, 1, 1], [], []>} : vector<8x8xbf16>, vector<8x128xbf16>, vector<8x128xf32> -> vector<8x128xf32>
    %42 = arith.addf %38, %41 : vector<8x128xf32>
    %43 = vector.extract_strided_slice %15 {offsets = [0, 138], sizes = [8, 128], strides = [1, 1]} : vector<8x384xbf16> to vector<8x128xbf16>
    %c0_23 = arith.constant 0 : index
    %c56 = arith.constant 56 : index
    %44 = vector.load %arg2[%c0_23, %c56] : memref<8x72xbf16, #tpu.memory_space<vmem>>, vector<8x8xbf16>
    %cst_24 = arith.constant dense<0.000000e+00> : vector<8x128xf32>
    %45 = tpu.matmul %44, %43, %cst_24 {dimension_numbers = #tpu.dot_dimension_numbers<[1], [0], [0], [1], [0, 0, 1, 1], [], []>} : vector<8x8xbf16>, vector<8x128xbf16>, vector<8x128xf32> -> vector<8x128xf32>
    %46 = arith.addf %42, %45 : vector<8x128xf32>
    %47 = vector.extract_strided_slice %15 {offsets = [0, 139], sizes = [8, 128], strides = [1, 1]} : vector<8x384xbf16> to vector<8x128xbf16>
    %c0_25 = arith.constant 0 : index
    %c64 = arith.constant 64 : index
    %48 = vector.load %arg2[%c0_25, %c64] : memref<8x72xbf16, #tpu.memory_space<vmem>>, vector<8x8xbf16>
    %cst_26 = arith.constant dense<0.000000e+00> : vector<8x128xf32>
    %49 = tpu.matmul %48, %47, %cst_26 {dimension_numbers = #tpu.dot_dimension_numbers<[1], [0], [0], [1], [0, 0, 1, 1], [], []>} : vector<8x8xbf16>, vector<8x128xbf16>, vector<8x128xf32> -> vector<8x128xf32>
    %50 = arith.addf %46, %49 : vector<8x128xf32>
    %c0_27 = arith.constant 0 : index
    %c128 = arith.constant 128 : index
    %51 = vector.load %arg3[%c0_27, %c128] : memref<1x384xbf16, #tpu.memory_space<vmem>>, vector<1x128xbf16>
    %52 = arith.extf %51 : vector<1x128xbf16> to vector<1x128xf32>
    %53 = vector.broadcast %52 : vector<1x128xf32> to vector<8x128xf32>
    %54 = arith.mulf %50, %53 : vector<8x128xf32>
    %cst_28 = arith.constant 0.000000e+00 : f32
    %55 = vector.broadcast %cst_28 : f32 to vector<8x1xf32>
    %cst_29 = arith.constant 0.000000e+00 : f32
    %56 = vector.broadcast %cst_29 : f32 to vector<8x1xf32>
    %cst_30 = arith.constant dense<0.000000e+00> : vector<8xf32>
    %57 = vector.multi_reduction <add>, %54, %cst_30 [1] : vector<8x128xf32> to vector<8xf32>
    %58 = vector.shape_cast %57 : vector<8xf32> to vector<8x1xf32>
    %59 = arith.addf %55, %58 : vector<8x1xf32>
    %60 = arith.mulf %54, %54 : vector<8x128xf32>
    %cst_31 = arith.constant dense<0.000000e+00> : vector<8xf32>
    %61 = vector.multi_reduction <add>, %60, %cst_31 [1] : vector<8x128xf32> to vector<8xf32>
    %62 = vector.shape_cast %61 : vector<8xf32> to vector<8x1xf32>
    %63 = arith.addf %56, %62 : vector<8x1xf32>
    %c0_32 = arith.constant 0 : index
    %c0_33 = arith.constant 0 : index
    %c0_34 = arith.constant 0 : index
    %64 = vector.load %arg7[%c0_32, %c0_33, %c0_34] : memref<1x8x2xf32, #tpu.memory_space<vmem>>, vector<1x8x1xf32>
    %65 = vector.shape_cast %64 : vector<1x8x1xf32> to vector<8x1xf32>
    %66 = vector.shape_cast %59 : vector<8x1xf32> to vector<1x8x1xf32>
    tpu.vector_store %arg7[%c0_32, %c0_33, %c0_34], %66 {strides = array<i32>} : memref<1x8x2xf32, #tpu.memory_space<vmem>>, vector<1x8x1xf32>,
    %c0_35 = arith.constant 0 : index
    %c0_36 = arith.constant 0 : index
    %c1 = arith.constant 1 : index
    %67 = vector.load %arg7[%c0_35, %c0_36, %c1] : memref<1x8x2xf32, #tpu.memory_space<vmem>>, vector<1x8x1xf32>
    %68 = vector.shape_cast %67 : vector<1x8x1xf32> to vector<8x1xf32>
    %69 = vector.shape_cast %63 : vector<8x1xf32> to vector<1x8x1xf32>
    tpu.vector_store %arg7[%c0_35, %c0_36, %c1], %69 {strides = array<i32>} : memref<1x8x2xf32, #tpu.memory_space<vmem>>, vector<1x8x1xf32>,
    %70 = arith.truncf %54 : vector<8x128xf32> to vector<8x128xbf16>
    %c0_37 = arith.constant 0 : index
    %c0_38 = arith.constant 0 : index
    %c128_39 = arith.constant 128 : index
    %71 = vector.load %arg6[%c0_37, %c0_38, %c128_39] : memref<1x8x384xbf16, #tpu.memory_space<vmem>>, vector<1x8x128xbf16>
    %72 = vector.shape_cast %71 : vector<1x8x128xbf16> to vector<8x128xbf16>
    %73 = vector.shape_cast %70 : vector<8x128xbf16> to vector<1x8x128xbf16>
    tpu.vector_store %arg6[%c0_37, %c0_38, %c128_39], %73 {strides = array<i32>} : memref<1x8x384xbf16, #tpu.memory_space<vmem>>, vector<1x8x128xbf16>,
    %cst_40 = arith.constant 0.000000e+00 : bf16
    %74 = vector.broadcast %cst_40 : bf16 to vector<8x128xbf16>
    %c0_41 = arith.constant 0 : index
    %c0_42 = arith.constant 0 : index
    %c0_43 = arith.constant 0 : index
    %75 = vector.load %arg6[%c0_41, %c0_42, %c0_43] : memref<1x8x384xbf16, #tpu.memory_space<vmem>>, vector<1x8x128xbf16>
    %76 = vector.shape_cast %75 : vector<1x8x128xbf16> to vector<8x128xbf16>
    %77 = vector.shape_cast %74 : vector<8x128xbf16> to vector<1x8x128xbf16>
    tpu.vector_store %arg6[%c0_41, %c0_42, %c0_43], %77 {strides = array<i32>} : memref<1x8x384xbf16, #tpu.memory_space<vmem>>, vector<1x8x128xbf16>,
    %cst_44 = arith.constant 0.000000e+00 : bf16
    %78 = vector.broadcast %cst_44 : bf16 to vector<8x128xbf16>
    %c0_45 = arith.constant 0 : index
    %c0_46 = arith.constant 0 : index
    %c256 = arith.constant 256 : index
    %79 = vector.load %arg6[%c0_45, %c0_46, %c256] : memref<1x8x384xbf16, #tpu.memory_space<vmem>>, vector<1x8x128xbf16>
    %80 = vector.shape_cast %79 : vector<1x8x128xbf16> to vector<8x128xbf16>
    %81 = vector.shape_cast %78 : vector<8x128xbf16> to vector<1x8x128xbf16>
    tpu.vector_store %arg6[%c0_45, %c0_46, %c256], %81 {strides = array<i32>} : memref<1x8x384xbf16, #tpu.memory_space<vmem>>, vector<1x8x128xbf16>,
    return
  }
  func.func @transform_0(%arg0: i32) -> (i32, i32, i32) {
    %c0_i32 = arith.constant 0 : i32
    %c0_i32_0 = arith.constant 0 : i32
    %c0_i32_1 = arith.constant 0 : i32
    return %arg0, %c0_i32, %c0_i32_0 : i32, i32, i32
  }
  func.func @transform_1(%arg0: i32) -> (i32, i32) {
    %c0_i32 = arith.constant 0 : i32
    %c0_i32_0 = arith.constant 0 : i32
    %c0_i32_1 = arith.constant 0 : i32
    return %c0_i32, %c0_i32_0 : i32, i32
  }
  func.func @transform_2(%arg0: i32) -> (i32, i32) {
    %c0_i32 = arith.constant 0 : i32
    %c0_i32_0 = arith.constant 0 : i32
    %c0_i32_1 = arith.constant 0 : i32
    return %c0_i32, %c0_i32_0 : i32, i32
  }
  func.func @transform_3(%arg0: i32) -> (i32, i32) {
    %c0_i32 = arith.constant 0 : i32
    %c0_i32_0 = arith.constant 0 : i32
    %c0_i32_1 = arith.constant 0 : i32
    return %c0_i32, %c0_i32_0 : i32, i32
  }
  func.func @transform_4(%arg0: i32) -> (i32, i32) {
    %c0_i32 = arith.constant 0 : i32
    %c0_i32_0 = arith.constant 0 : i32
    %c0_i32_1 = arith.constant 0 : i32
    return %c0_i32, %c0_i32_0 : i32, i32
  }
  func.func @transform_5(%arg0: i32) -> (i32, i32, i32) {
    %c0_i32 = arith.constant 0 : i32
    %c0_i32_0 = arith.constant 0 : i32
    %c0_i32_1 = arith.constant 0 : i32
    return %arg0, %c0_i32, %c0_i32_0 : i32, i32, i32
  }
  func.func @transform_6(%arg0: i32) -> (i32, i32, i32) {
    %c0_i32 = arith.constant 0 : i32
    %c0_i32_0 = arith.constant 0 : i32
    %c0_i32_1 = arith.constant 0 : i32
    return %arg0, %c0_i32, %c0_i32_0 : i32, i32, i32
  }
}

module attributes {stable_mosaic.version = 11 : i64} {
  func.func @_conv_stats_kernel(%arg0: i32, %arg1: i32, %arg2: memref<1x4x128xbf16, #tpu.memory_space<vmem>>, %arg3: memref<8x4xbf16, #tpu.memory_space<vmem>>, %arg4: memref<1x8x128xbf16, #tpu.memory_space<vmem>>, %arg5: memref<1x1x8x2xf32, #tpu.memory_space<vmem>>) attributes {dimension_semantics = [#tpu.dimension_semantics<parallel>, #tpu.dimension_semantics<parallel>], iteration_bounds = array<i64: 2, 1>, scalar_prefetch = 0 : i64, scratch_operands = 0 : i64, tpu.core_type = #tpu.core_type<tc>, window_params = [{transform_indices = @transform_0, window_bounds = array<i64: 1, 4, 128>}, {pipeline_mode = #tpu.pipeline_mode<synchronous>, transform_indices = @transform_1, window_bounds = array<i64: 8, 4>}, {transform_indices = @transform_2, window_bounds = array<i64: 1, 8, 128>}, {transform_indices = @transform_3, window_bounds = array<i64: 1, 1, 8, 2>}]} {
    %c0 = arith.constant 0 : index
    %c0_0 = arith.constant 0 : index
    %0 = vector.load %arg3[%c0, %c0_0] : memref<8x4xbf16, #tpu.memory_space<vmem>>, vector<8x4xbf16>
    %c0_1 = arith.constant 0 : index
    %c0_2 = arith.constant 0 : index
    %c0_3 = arith.constant 0 : index
    %1 = vector.load %arg2[%c0_1, %c0_2, %c0_3] : memref<1x4x128xbf16, #tpu.memory_space<vmem>>, vector<1x4x128xbf16>
    %2 = vector.shape_cast %1 : vector<1x4x128xbf16> to vector<4x128xbf16>
    %cst = arith.constant dense<0.000000e+00> : vector<8x128xf32>
    %3 = tpu.matmul %0, %2, %cst {dimension_numbers = #tpu.dot_dimension_numbers<[1], [0], [0], [1], [0, 0, 1, 1], [], []>} : vector<8x4xbf16>, vector<4x128xbf16>, vector<8x128xf32> -> vector<8x128xf32>
    %4 = arith.truncf %3 : vector<8x128xf32> to vector<8x128xbf16>
    %c0_4 = arith.constant 0 : index
    %c0_5 = arith.constant 0 : index
    %c0_6 = arith.constant 0 : index
    %5 = vector.load %arg4[%c0_4, %c0_5, %c0_6] : memref<1x8x128xbf16, #tpu.memory_space<vmem>>, vector<1x8x128xbf16>
    %6 = vector.shape_cast %5 : vector<1x8x128xbf16> to vector<8x128xbf16>
    %7 = vector.shape_cast %4 : vector<8x128xbf16> to vector<1x8x128xbf16>
    tpu.vector_store %arg4[%c0_4, %c0_5, %c0_6], %7 {strides = array<i32>} : memref<1x8x128xbf16, #tpu.memory_space<vmem>>, vector<1x8x128xbf16>,
    %cst_7 = arith.constant 0.000000e+00 : f32
    %8 = vector.broadcast %cst_7 : f32 to vector<8x1xf32>
    %cst_8 = arith.constant 0.000000e+00 : f32
    %9 = vector.broadcast %cst_8 : f32 to vector<8x1xf32>
    %cst_9 = arith.constant dense<0.000000e+00> : vector<8xf32>
    %10 = vector.multi_reduction <add>, %3, %cst_9 [1] : vector<8x128xf32> to vector<8xf32>
    %11 = vector.shape_cast %10 : vector<8xf32> to vector<8x1xf32>
    %12 = arith.addf %8, %11 : vector<8x1xf32>
    %13 = arith.mulf %3, %3 : vector<8x128xf32>
    %cst_10 = arith.constant dense<0.000000e+00> : vector<8xf32>
    %14 = vector.multi_reduction <add>, %13, %cst_10 [1] : vector<8x128xf32> to vector<8xf32>
    %15 = vector.shape_cast %14 : vector<8xf32> to vector<8x1xf32>
    %16 = arith.addf %9, %15 : vector<8x1xf32>
    %c0_11 = arith.constant 0 : index
    %c0_12 = arith.constant 0 : index
    %c0_13 = arith.constant 0 : index
    %c0_14 = arith.constant 0 : index
    %17 = vector.load %arg5[%c0_11, %c0_12, %c0_13, %c0_14] : memref<1x1x8x2xf32, #tpu.memory_space<vmem>>, vector<1x1x8x1xf32>
    %18 = vector.shape_cast %17 : vector<1x1x8x1xf32> to vector<8x1xf32>
    %19 = vector.shape_cast %12 : vector<8x1xf32> to vector<1x1x8x1xf32>
    tpu.vector_store %arg5[%c0_11, %c0_12, %c0_13, %c0_14], %19 {strides = array<i32>} : memref<1x1x8x2xf32, #tpu.memory_space<vmem>>, vector<1x1x8x1xf32>,
    %c0_15 = arith.constant 0 : index
    %c0_16 = arith.constant 0 : index
    %c0_17 = arith.constant 0 : index
    %c1 = arith.constant 1 : index
    %20 = vector.load %arg5[%c0_15, %c0_16, %c0_17, %c1] : memref<1x1x8x2xf32, #tpu.memory_space<vmem>>, vector<1x1x8x1xf32>
    %21 = vector.shape_cast %20 : vector<1x1x8x1xf32> to vector<8x1xf32>
    %22 = vector.shape_cast %16 : vector<8x1xf32> to vector<1x1x8x1xf32>
    tpu.vector_store %arg5[%c0_15, %c0_16, %c0_17, %c1], %22 {strides = array<i32>} : memref<1x1x8x2xf32, #tpu.memory_space<vmem>>, vector<1x1x8x1xf32>,
    return
  }
  func.func @transform_0(%arg0: i32, %arg1: i32) -> (i32, i32, i32) {
    %c0_i32 = arith.constant 0 : i32
    %c0_i32_0 = arith.constant 0 : i32
    return %arg0, %c0_i32, %arg1 : i32, i32, i32
  }
  func.func @transform_1(%arg0: i32, %arg1: i32) -> (i32, i32) {
    %c0_i32 = arith.constant 0 : i32
    %c0_i32_0 = arith.constant 0 : i32
    %c0_i32_1 = arith.constant 0 : i32
    return %c0_i32, %c0_i32_0 : i32, i32
  }
  func.func @transform_2(%arg0: i32, %arg1: i32) -> (i32, i32, i32) {
    %c0_i32 = arith.constant 0 : i32
    %c0_i32_0 = arith.constant 0 : i32
    return %arg0, %c0_i32, %arg1 : i32, i32, i32
  }
  func.func @transform_3(%arg0: i32, %arg1: i32) -> (i32, i32, i32, i32) {
    %c0_i32 = arith.constant 0 : i32
    %c0_i32_0 = arith.constant 0 : i32
    %c0_i32_1 = arith.constant 0 : i32
    return %arg0, %arg1, %c0_i32, %c0_i32_0 : i32, i32, i32, i32
  }
}

module attributes {stable_mosaic.version = 11 : i64} {
  func.func @_bn_bn_add_relu_kernel(%arg0: i32, %arg1: i32, %arg2: memref<1x8x128xbf16, #tpu.memory_space<vmem>>, %arg3: memref<1x8x128xbf16, #tpu.memory_space<vmem>>, %arg4: memref<1x8x1xf32, #tpu.memory_space<vmem>>, %arg5: memref<1x8x1xf32, #tpu.memory_space<vmem>>, %arg6: memref<1x8x1xf32, #tpu.memory_space<vmem>>, %arg7: memref<1x8x1xf32, #tpu.memory_space<vmem>>, %arg8: memref<1x8x128xf32, #tpu.memory_space<vmem>>) attributes {dimension_semantics = [#tpu.dimension_semantics<parallel>, #tpu.dimension_semantics<parallel>], iteration_bounds = array<i64: 2, 1>, scalar_prefetch = 0 : i64, scratch_operands = 0 : i64, tpu.core_type = #tpu.core_type<tc>, window_params = [{transform_indices = @transform_0, window_bounds = array<i64: 1, 8, 128>}, {transform_indices = @transform_1, window_bounds = array<i64: 1, 8, 128>}, {pipeline_mode = #tpu.pipeline_mode<synchronous>, transform_indices = @transform_2, window_bounds = array<i64: 1, 8, 1>}, {pipeline_mode = #tpu.pipeline_mode<synchronous>, transform_indices = @transform_3, window_bounds = array<i64: 1, 8, 1>}, {pipeline_mode = #tpu.pipeline_mode<synchronous>, transform_indices = @transform_4, window_bounds = array<i64: 1, 8, 1>}, {pipeline_mode = #tpu.pipeline_mode<synchronous>, transform_indices = @transform_5, window_bounds = array<i64: 1, 8, 1>}, {transform_indices = @transform_6, window_bounds = array<i64: 1, 8, 128>}]} {
    %c0 = arith.constant 0 : index
    %c0_0 = arith.constant 0 : index
    %c0_1 = arith.constant 0 : index
    %0 = vector.load %arg2[%c0, %c0_0, %c0_1] : memref<1x8x128xbf16, #tpu.memory_space<vmem>>, vector<1x8x128xbf16>
    %1 = arith.extf %0 : vector<1x8x128xbf16> to vector<1x8x128xf32>
    %c0_2 = arith.constant 0 : index
    %c0_3 = arith.constant 0 : index
    %c0_4 = arith.constant 0 : index
    %2 = vector.load %arg3[%c0_2, %c0_3, %c0_4] : memref<1x8x128xbf16, #tpu.memory_space<vmem>>, vector<1x8x128xbf16>
    %3 = arith.extf %2 : vector<1x8x128xbf16> to vector<1x8x128xf32>
    %c0_5 = arith.constant 0 : index
    %c0_6 = arith.constant 0 : index
    %c0_7 = arith.constant 0 : index
    %4 = vector.load %arg4[%c0_5, %c0_6, %c0_7] : memref<1x8x1xf32, #tpu.memory_space<vmem>>, vector<1x8x1xf32>
    %5 = vector.broadcast %4 : vector<1x8x1xf32> to vector<1x8x128xf32>
    %6 = arith.mulf %1, %5 : vector<1x8x128xf32>
    %c0_8 = arith.constant 0 : index
    %c0_9 = arith.constant 0 : index
    %c0_10 = arith.constant 0 : index
    %7 = vector.load %arg5[%c0_8, %c0_9, %c0_10] : memref<1x8x1xf32, #tpu.memory_space<vmem>>, vector<1x8x1xf32>
    %8 = vector.broadcast %7 : vector<1x8x1xf32> to vector<1x8x128xf32>
    %9 = arith.addf %6, %8 : vector<1x8x128xf32>
    %c0_11 = arith.constant 0 : index
    %c0_12 = arith.constant 0 : index
    %c0_13 = arith.constant 0 : index
    %10 = vector.load %arg6[%c0_11, %c0_12, %c0_13] : memref<1x8x1xf32, #tpu.memory_space<vmem>>, vector<1x8x1xf32>
    %11 = vector.broadcast %10 : vector<1x8x1xf32> to vector<1x8x128xf32>
    %12 = arith.mulf %3, %11 : vector<1x8x128xf32>
    %13 = arith.addf %9, %12 : vector<1x8x128xf32>
    %c0_14 = arith.constant 0 : index
    %c0_15 = arith.constant 0 : index
    %c0_16 = arith.constant 0 : index
    %14 = vector.load %arg7[%c0_14, %c0_15, %c0_16] : memref<1x8x1xf32, #tpu.memory_space<vmem>>, vector<1x8x1xf32>
    %15 = vector.broadcast %14 : vector<1x8x1xf32> to vector<1x8x128xf32>
    %16 = arith.addf %13, %15 : vector<1x8x128xf32>
    %cst = arith.constant 0.000000e+00 : f32
    %17 = vector.broadcast %cst : f32 to vector<1x8x128xf32>
    %18 = arith.maximumf %16, %17 : vector<1x8x128xf32>
    %c0_17 = arith.constant 0 : index
    %c0_18 = arith.constant 0 : index
    %c0_19 = arith.constant 0 : index
    %19 = vector.load %arg8[%c0_17, %c0_18, %c0_19] : memref<1x8x128xf32, #tpu.memory_space<vmem>>, vector<1x8x128xf32>
    tpu.vector_store %arg8[%c0_17, %c0_18, %c0_19], %18 {strides = array<i32>} : memref<1x8x128xf32, #tpu.memory_space<vmem>>, vector<1x8x128xf32>,
    return
  }
  func.func @transform_0(%arg0: i32, %arg1: i32) -> (i32, i32, i32) {
    %c0_i32 = arith.constant 0 : i32
    %c0_i32_0 = arith.constant 0 : i32
    return %arg0, %c0_i32, %arg1 : i32, i32, i32
  }
  func.func @transform_1(%arg0: i32, %arg1: i32) -> (i32, i32, i32) {
    %c0_i32 = arith.constant 0 : i32
    %c0_i32_0 = arith.constant 0 : i32
    return %arg0, %c0_i32, %arg1 : i32, i32, i32
  }
  func.func @transform_2(%arg0: i32, %arg1: i32) -> (i32, i32, i32) {
    %c0_i32 = arith.constant 0 : i32
    %c0_i32_0 = arith.constant 0 : i32
    %c0_i32_1 = arith.constant 0 : i32
    %c0_i32_2 = arith.constant 0 : i32
    return %c0_i32, %c0_i32_0, %c0_i32_1 : i32, i32, i32
  }
  func.func @transform_3(%arg0: i32, %arg1: i32) -> (i32, i32, i32) {
    %c0_i32 = arith.constant 0 : i32
    %c0_i32_0 = arith.constant 0 : i32
    %c0_i32_1 = arith.constant 0 : i32
    %c0_i32_2 = arith.constant 0 : i32
    return %c0_i32, %c0_i32_0, %c0_i32_1 : i32, i32, i32
  }
  func.func @transform_4(%arg0: i32, %arg1: i32) -> (i32, i32, i32) {
    %c0_i32 = arith.constant 0 : i32
    %c0_i32_0 = arith.constant 0 : i32
    %c0_i32_1 = arith.constant 0 : i32
    %c0_i32_2 = arith.constant 0 : i32
    return %c0_i32, %c0_i32_0, %c0_i32_1 : i32, i32, i32
  }
  func.func @transform_5(%arg0: i32, %arg1: i32) -> (i32, i32, i32) {
    %c0_i32 = arith.constant 0 : i32
    %c0_i32_0 = arith.constant 0 : i32
    %c0_i32_1 = arith.constant 0 : i32
    %c0_i32_2 = arith.constant 0 : i32
    return %c0_i32, %c0_i32_0, %c0_i32_1 : i32, i32, i32
  }
  func.func @transform_6(%arg0: i32, %arg1: i32) -> (i32, i32, i32) {
    %c0_i32 = arith.constant 0 : i32
    %c0_i32_0 = arith.constant 0 : i32
    return %arg0, %c0_i32, %arg1 : i32, i32, i32
  }
}

</mosaic_0001>

<bundles_post_ra>
// kernel: _lambda_.5
= control target key start
LH: loop header
LB: loop body
LE: loop exit
PB: predicated region body
PF: predicated region fallthrough
CT: control target
= control target key end

     0   :  { %s774_s21 = smov 0   ;;  %s852_s0 = inlined_call_operand.vmem [shape: bf16[2,8,384], index: 0, kind: input, shape index: {}]   ;;  %s853_s1 = inlined_call_operand.vmem [shape: bf16[8,72], index: 1, kind: input, shape index: {}]   ;;  %s854_s2 = inlined_call_operand.vmem [shape: bf16[1,384], index: 2, kind: input, shape index: {}]   ;;  %s855_s3 = inlined_call_operand.vmem [shape: f32[8,1], index: 3, kind: input, shape index: {}]   ;;  %s856_s4 = inlined_call_operand.vmem [shape: f32[8,1], index: 4, kind: input, shape index: {}]   ;;  %s857_s5 = inlined_call_operand.vmem [shape: bf16[2,8,384], index: 5, kind: output, shape index: {0}]   ;;  %s858_s6 = inlined_call_operand.vmem [shape: f32[2,8,2], index: 6, kind: output, shape index: {1}]  }
   0x1 LB: > { %s668_s22 = sadd.s32 4294967295, %s720_s21   ;;  %p672_p0 = scmp.ge.s32.totalorder %s720_s21, 1  ;;  %s720_s21 = sphi %s774_s21, %s17_s21  }
   0x2   : > { %p215_p1 = scmp.lt.s32.totalorder %s720_s21, 3 }
   0x4   : > { %p216_p2 = pnand %p672_p0, %p215_p1 }
   0x5   : > { %p249_p3 = scmp.lt.s32.totalorder (!%p216_p2), %s668_s22, 1  ;;  %s723_s28 = smov (!%p216_p2), 120  }
   0x6   : > { %219 = sbr.rel (%p216_p2) target bundleno = 569 (0x239), region = 40  ;;  %s724_s29 = smov (!%p216_p2), 96  }
   0x7   : > { %s725_s11 = smov (!%p216_p2), 112   ;;  %s726_s12 = smov (!%p216_p2), 104  }
   0x8   : > { %s727_s13 = smov (!%p216_p2), 80   ;;  %s728_s14 = smov (!%p216_p2), 72  }
   0x9   : > { %s729_s20 = smov (!%p216_p2), 9   ;;  %s730_s23 = smov (!%p216_p2), 10  }
   0xa   : > { %s731_s24 = smov (!%p216_p2), 11   ;;  %s732_s25 = smov (!%p216_p2), 1  }
   0xb   : > { %v269_v0 = vld [vmem:[%s855_s3] sm:$0xff]  ;;  %v722_v2 = vmov 0   ;;  %s860_s22 = smov (!%p249_p3, %s668_s22), 1  ;;  %s733_s26 = smov 119   ;;  %vm376_vm0 = vcmask 72704   ;;  %vm328_vm1 = vcmask 1043456  }
   0xc   : > { %v788_v1 = vld [vmem:[%s853_s1] sm:$0xf]  ;;  %713 = vset.pattern.permute.xlu0 %v722_v2  ;;  %s687_s27 = smul.u32 12, %s860_s22  ;;  %s737_s30 = smov 88   ;;  %vm324_vm2 = vcmask 64512   ;;  %vm322_vm3 = vcmask 80896  }
   0xd   : > { %v309_v3 = vunpack.c.l.b16 %v788_v1  ;;  %272 = vperm.xlu0 %713, %v269_v0   ;;  %v278_v5 = vld [vmem:[%s856_s4] sm:$0xff]  ;;  %s738_s7 = smov 64   ;;  %vm485_vm4 = vcmask 973824   ;;  %vm404_vm5 = vcmask 7168   ;;  %vm349_vm6 = vcmask 89088  }
   0xe   : > { %s801_s8 = scalar_lea.vmem %s857_s5, %s687_s27  ;;  %s253_s17 = scalar_lea.vmem %s852_s0, %s687_s27  ;;  %v290_v6 = vld [vmem:[%s854_s2] sm:$0x7]  ;;  %vm541_vm7 = vcmask 957440   ;;  %vm513_vm8 = vcmask 965632   ;;  %vm457_vm9 = vcmask 1039360   ;;  %vm576_vm10 = vcmask 15368  }
   0xf   : > { %v793_v4 = vpack.c.b16 %v309_v3, %v309_v3  ;;  %580 = vst [vmem:[%s801_s8] sm:$0xf] %v722_v2  ;;  %v264_v8 = vld [vmem:[%s253_s17] sm:$0xff]  ;;  %v291_v9 = vunpack.c.l.bf16 %v290_v6  ;;  %v265_v12 = vld [vmem:[%s253_s17 + $0x8] sm:$0xf]  ;;  %s734_s27 = smov 127  }
  0x10   : > { %581 = vst [vmem:[%s801_s8 + $0x8] sm:$0xf] %v722_v2  ;;  %v266_v10 = vunpack.c.l.bf16 %v264_v8  ;;  %v267_v11 = vunpack.c.h.bf16 %v264_v8  ;;  %v268_v17 = vunpack.c.l.bf16 %v265_v12 }
  0x11   : > { %311 = vrot.lane.b32.xlu2 %v793_v4, %s723_s28  ;;  %426 = vrot.lane.b32.xlu1 %v793_v4, %s724_s29  ;;  %v293_v13 = vperm.slane %v291_v9, 0  ;;  %v294_v14 = vperm.slane %v291_v9, 2  ;;  %v295_v28 = vperm.slane %v291_v9, 4  ;;  %s735_s28 = smov 118   ;;  %s736_s29 = smov 117  }
  0x13   : > { %v299_v19 = vperm.slane %v293_v13, 0  ;;  %v300_v20 = vperm.slane %v294_v14, 0  ;;  %v301_v33 = vperm.slane %v295_v28, 0 }
  0x15   : > { %281 = vperm.xlu0 %713, %v278_v5  }
  0x19   : > { %370 = vrot.lane.b32.xlu2 %v793_v4, %s725_s11  ;;  %s675_s11 = sshll.u32 %s860_s22, 3 }
  0x1d   : > { %398 = vrot.lane.b32.xlu0 %v793_v4, %s726_s12 }
  0x21   : > { %479 = vrot.lane.b32.xlu2 %v793_v4, %s727_s13 }
  0x25   : > { %507 = vrot.lane.b32.xlu0 %v793_v4, %s728_s14  ;;  %s262_s14 = scalar_lea.vmem %s858_s6, %s675_s11 }
  0x6b   : > { %v312_v41 = vpop.permute.xlu2 %311 }
  0x73   : > { %v371_v42 = vpop.permute.xlu2 %370 }
  0x7b   : > { %v480_v44 = vpop.permute.xlu2 %479 }
  0x7f   : > { %v273_v7 = vpop.permute.xlu0 %272 }
  0x80   : > { %v275_v15 = vmul.f32 %v273_v7, %v266_v10  ;;  %v276_v16 = vmul.f32 %v273_v7, %v267_v11  ;;  %v277_v25 = vmul.f32 %v273_v7, %v268_v17 }
  0x83   : > { %v427_v46 = vpop.permute.xlu1 %426 }
  0x87   : > { %v282_v18 = vpop.permute.xlu0 %281 }
  0x88   : > { %v284_v21 = vadd.f32 %v282_v18, %v275_v15  ;;  %v285_v22 = vadd.f32 %v282_v18, %v276_v16  ;;  %v286_v29 = vadd.f32 %v282_v18, %v277_v25 }
  0x8a   : > { %v287_v23 = vmax.f32 %v284_v21, 0.0  ;;  %v288_v24 = vmax.f32 %v285_v22, 0.0  ;;  %v289_v34 = vmax.f32 %v286_v29, 0.0 }
  0x8c   : > { %v302_v26 = vmul.f32 %v299_v19, %v287_v23  ;;  %v303_v27 = vmul.f32 %v300_v20, %v288_v24  ;;  %v304_v37 = vmul.f32 %v301_v33, %v289_v34 }
  0x8e   : > { %v305_v30 = vpack.c.bf16 %v303_v27, %v302_v26  ;;  %v306_v38 = vpack.c.bf16 %v304_v37, %v304_v37 }
  0x8f   : > { %v399_v43 = vpop.permute.xlu0 %398 }
  0x90   : > { %v315_v31 = vunpack.c.h.b16 %v305_v30  ;;  %v314_v32 = vunpack.c.l.b16 %v305_v30  ;;  %v451_v39 = vunpack.c.l.b16 %v306_v38 }
  0x92   : > { %v317_v35 = vpack.c.b16 %v315_v31, %v315_v31  ;;  %v316_v36 = vpack.c.b16 %v314_v32, %v314_v32  ;;  %v452_v40 = vpack.c.b16 %v451_v39, %v451_v39 }
  0x94   : > { %374 = vrot.lane.b32.xlu0 %v317_v35, %s729_s20  ;;  %372 = vrot.lane.b32.xlu2 %v316_v36, %s729_s20  ;;  %v432_v58 = vsel %vm328_vm1, %v317_v35, 0 }
  0x95   : > { %318 = vrot.lane.b32.xlu1 %v316_v36, %s730_s23 }
  0x97   : > { %v508_v45 = vpop.permute.xlu0 %507 }
  0x9c   : > { %345 = vrot.lane.b32.xlu0 %v316_v36, %s731_s24  ;;  %402 = vrot.lane.b32.xlu2 %v317_v35, %s732_s25 }
  0x9d   : > { %320 = vrot.lane.b32.xlu1 %v317_v35, %s730_s23 }
  0xa4   : > { %483 = vrot.lane.b32.xlu0 %v452_v40, %s733_s26  ;;  %481 = vrot.lane.b32.xlu2 %v317_v35, %s733_s26 }
  0xa5   : > { %400 = vrot.lane.b32.xlu1 %v316_v36, %s732_s25  ;;  %v563_v36 = vld [vmem:[%s854_s2 + $0x1] sm:$0x1] }
  0xac   : > { %453 = vrot.lane.b32.xlu0 %v317_v35, %s734_s27  ;;  %511 = vrot.lane.b32.xlu2 %v452_v40, %s735_s28 }
  0xad   : > { %347 = vrot.lane.b32.xlu1 %v317_v35, %s731_s24 }
  0xb4   : > { %539 = vrot.lane.b32.xlu0 %v452_v40, %s736_s29  ;;  %537 = vrot.lane.b32.xlu2 %v317_v35, %s736_s29 }
  0xb5   : > { %509 = vrot.lane.b32.xlu1 %v317_v35, %s735_s28 }
  0xbd   : > { %455 = vrot.lane.b32.xlu1 %v452_v40, %s734_s27  ;;  %v564_v40 = vunpack.c.l.bf16 %v563_v36 }
  0xc5   : > { %448 = vrot.lane.b32.xlu1 %v793_v4, %s737_s30 }
  0xcd   : > { %535 = vrot.lane.b32.xlu1 %v793_v4, %s738_s7 }
  0xee   : > { %v373_v47 = vpop.permute.xlu2 %372 }
  0xf6   : > { %v403_v51 = vpop.permute.xlu2 %402 }
  0xfe   : > { %v482_v57 = vpop.permute.xlu2 %481 }
 0x106   : > { %v375_v48 = vpop.permute.xlu0 %374  ;;  %v512_v2 = vpop.permute.xlu2 %511 }
 0x107   : > { %v319_v49 = vpop.permute.xlu1 %318  ;;  %v377_v50 = vsel %vm376_vm0, %v373_v47, %v375_v48 }
 0x108   : > { %v382_v52 = vsel %vm328_vm1, %v377_v50, 0 }
 0x109   : > { %391 = vmatpush.bf16.msra.mxu2 %v382_v52 }
 0x10c   : > { %678 = vmatmul.msk.bf16.vlgmr.msra.gmra.mxu2 %vm324_vm2, %v371_v42  ;;  %v565_v42 = vperm.slane %v564_v40, 0 }
 0x10e   : > { %v346_v53 = vpop.permute.xlu0 %345  ;;  %v538_v7 = vpop.permute.xlu2 %537 }
 0x10f   : > { %v321_v54 = vpop.permute.xlu1 %320 }
 0x110   : > { %v323_v55 = vsel %vm322_vm3, %v319_v49, %v321_v54 }
 0x111   : > { %v330_v56 = vsel %vm328_vm1, %v323_v55, 0 }
 0x112   : > { %339 = vmatpush.bf16.msra.mxu0 %v330_v56 }
 0x115   : > { %676 = vmatmul.msk.bf16.vlgmr.msra.gmra.mxu0 %vm324_vm2, %v312_v41 }
 0x116   : > { %441 = vmatpush.bf16.msrb.mxu0 %v432_v58  ;;  %v484_v59 = vpop.permute.xlu0 %483 }
 0x117   : > { %v401_v60 = vpop.permute.xlu1 %400  ;;  %v486_v61 = vsel %vm485_vm4, %v482_v57, %v484_v59 }
 0x118   : > { %v405_v62 = vsel %vm404_vm5, %v401_v60, %v403_v51  ;;  %v491_v63 = vsel %vm328_vm1, %v486_v61, 0 }
 0x119   : > { %v410_v0 = vsel %vm328_vm1, %v405_v62, 0  ;;  %500 = vmatpush.bf16.msrb.mxu2 %v491_v63 }
 0x11a   : > { %419 = vmatpush.bf16.msra.mxu3 %v410_v0 }
 0x11c   : > { %682 = vmatmul.msk.bf16.vlgmr.msrb.gmra.mxu2 %vm324_vm2, %v480_v44 }
 0x11d   : > { %679 = vmatmul.msk.bf16.vlgmr.msra.gmra.mxu3 %vm324_vm2, %v399_v43 }
 0x11e   : > { %v454_v3 = vpop.permute.xlu0 %453 }
 0x11f   : > { %v348_v4 = vpop.permute.xlu1 %347 }
 0x120   : > { %v350_v5 = vsel %vm349_vm6, %v346_v53, %v348_v4 }
 0x121   : > { %v355_v6 = vsel %vm328_vm1, %v350_v5, 0 }
 0x122   : > { %364 = vmatpush.bf16.msra.mxu1 %v355_v6 }
 0x125   : > { %677 = vmatmul.msk.bf16.vlgmr.msra.gmra.mxu1 %vm324_vm2, %v788_v1  ;;  %680 = vmatmul.msk.bf16.vlgmr.msrb.gmra.mxu0 %vm324_vm2, %v427_v46 }
 0x126   : > { %v540_v8 = vpop.permute.xlu0 %539 }
 0x127   : > { %v542_v9 = vsel %vm541_vm7, %v538_v7, %v540_v8  ;;  %v510_v10 = vpop.permute.xlu1 %509 }
 0x128   : > { %v547_v11 = vsel %vm328_vm1, %v542_v9, 0  ;;  %v514_v12 = vsel %vm513_vm8, %v510_v10, %v512_v2 }
 0x129   : > { %v519_v13 = vsel %vm328_vm1, %v514_v12, 0  ;;  %556 = vmatpush.bf16.msra.mxu0 %v547_v11 }
 0x12a   : > { %528 = vmatpush.bf16.msrb.mxu3 %v519_v13 }
 0x12d   : > { %683 = vmatmul.msk.bf16.vlgmr.msrb.gmra.mxu3 %vm324_vm2, %v508_v45 }
 0x12f   : > { %v456_v14 = vpop.permute.xlu1 %455 }
 0x130   : > { %v458_v15 = vsel %vm457_vm9, %v454_v3, %v456_v14 }
 0x131   : > { %v463_v1 = vsel %vm328_vm1, %v458_v15, 0 }
 0x132   : > { %472 = vmatpush.bf16.msrb.mxu1 %v463_v1 }
 0x137   : > { %v449_v16 = vpop.permute.xlu1 %448 }
 0x138   : > { %681 = vmatmul.msk.bf16.vlgmr.msrb.gmra.mxu1 %vm324_vm2, %v449_v16 }
 0x13f   : > { %v536_v17 = vpop.permute.xlu1 %535 }
 0x140   : > { %684 = vmatmul.msk.bf16.vlgmr.msra.gmra.mxu0 %vm324_vm2, %v536_v17 }
 0x18f   : > { %v393_v18 = vpop.f32.mrf.mxu2 }
 0x192   : > { %v341_v19 = vpop.f32.mrf.mxu0 }
 0x197   : > { %v395_v20 = vpop.f32.mrf.mxu2 }
 0x19a   : > { %v343_v21 = vpop.f32.mrf.mxu0 }
 0x19f   : > { %v502_v22 = vpop.f32.mrf.mxu2 }
 0x1a0   : > { %v421_v23 = vpop.f32.mrf.mxu3 }
 0x1a2   : > { %v366_v24 = vpop.f32.mrf.mxu1  ;;  %v443_v25 = vpop.f32.mrf.mxu0 }
 0x1a3   : > { %v367_v27 = vadd.f32 %v366_v24, %v341_v19 }
 0x1a5   : > { %v397_v31 = vadd.f32 %v393_v18, %v367_v27 }
 0x1a7   : > { %v504_v26 = vpop.f32.mrf.mxu2  ;;  %v425_v32 = vadd.f32 %v421_v23, %v397_v31 }
 0x1a8   : > { %v423_v28 = vpop.f32.mrf.mxu3 }
 0x1a9   : > { %v447_v34 = vadd.f32 %v443_v25, %v425_v32 }
 0x1aa   : > { %v445_v29 = vpop.f32.mrf.mxu0  ;;  %v368_v30 = vpop.f32.mrf.mxu1 }
 0x1b0   : > { %v530_v33 = vpop.f32.mrf.mxu3 }
 0x1b5   : > { %v474_v35 = vpop.f32.mrf.mxu1 }
 0x1b6   : > { %v478_v37 = vadd.f32 %v474_v35, %v447_v34 }
 0x1b8   : > { %v506_v38 = vadd.f32 %v502_v22, %v478_v37  ;;  %v532_v39 = vpop.f32.mrf.mxu3 }
 0x1ba   : > { %v534_v41 = vadd.f32 %v530_v33, %v506_v38 }
 0x1bd   : > { %v476_v43 = vpop.f32.mrf.mxu1  ;;  %v558_v44 = vpop.f32.mrf.mxu0 }
 0x1be   : > { %v562_v45 = vadd.f32 %v558_v44, %v534_v41 }
 0x1c0   : > { %v566_v46 = vmul.f32 %v565_v42, %v562_v45 }
 0x1c2   : > { %v578_v47 = vpack.c.bf16 %v566_v46, %v566_v46  ;;  %567 = vadd.xlane.f32.xlu2 %v566_v46  ;;  %v570_v48 = vmul.f32 %v566_v46, %v566_v46 }
 0x1c4   : > { %579 = vst [vmem:[%s801_s8 + $0x4] sm:$0xf] %v578_v47  ;;  %571 = vadd.xlane.f32.xlu0 %v570_v48 }
 0x1c5   : > { %v560_v49 = vpop.f32.mrf.mxu0 }
 0x235   : > { %v568_v50 = vpop.xlane.xlu2 %567 }
 0x236   : > { %575 = vst.msk [vmem:[%s262_s14] sm:$0xff] %vm404_vm5, %v568_v50 }
 0x237   : > { %v572_v51 = vpop.xlane.xlu0 %571 }
 0x238   : > { %577 = vst.msk [vmem:[%s262_s14] sm:$0xff] %vm576_vm10, %v572_v51 }
 0x239 PF: > { %s17_s21 = sadd.s32 1, %s720_s21  }
 0x23a   : > { %p14_p4 = scmp.ge.s32.totalorder %s17_s21, 4  }
 0x23c   :  { %16 = sbr.rel (!%p14_p4) target bundleno = 1 (0x1), region = 82 }

// kernel: _lambda_.4
= control target key start
LH: loop header
LB: loop body
LE: loop exit
PB: predicated region body
PF: predicated region fallthrough
CT: control target
= control target key end

     0   :  { %s483_s12 = smov 0   ;;  %s485_s13 = smov 0   ;;  %s522_s0 = inlined_call_operand.vmem [shape: bf16[2,36,128], index: 0, kind: input, shape index: {}]   ;;  %s523_s1 = inlined_call_operand.vmem [shape: bf16[8,36], index: 1, kind: input, shape index: {}]   ;;  %s524_s2 = inlined_call_operand.vmem [shape: bf16[2,8,128], index: 2, kind: output, shape index: {0}]   ;;  %s525_s3 = inlined_call_operand.vmem [shape: f32[2,1,8,2], index: 3, kind: output, shape index: {1}]  }
   0x1   :  { %s487_s14 = smov 0  }
   0x2 LB: > { %s26_s15 = sadd.s32 1, %s457_s13  ;;  %p397_p0 = scmp.ge.s32.totalorder %s461_s14, 1  ;;  %s461_s14 = sphi %s487_s14, %s14_s14   ;;  %s457_s13 = sphi %s485_s13, %s527_s13   ;;  %s453_s12 = sphi %s483_s12, %s526_s12  }
   0x3   : > { %p28_p1 = scmp.ge.s32.totalorder %s26_s15, 2  ;;  %p161_p2 = scmp.lt.s32.totalorder %s461_s14, 3 }
   0x5   : > { %s529_s15 = smov (%p28_p1, %s26_s15), 0  ;;  %p162_p3 = pnand %p397_p0, %p161_p2 }
   0x6   : > { %p197_p4 = scmp.lt.s32.totalorder (!%p162_p3), %s453_s12, 1 }
   0x7   : > { %165 = sbr.rel (%p162_p3) target bundleno = 284 (0x11c), region = 28 }
   0xc   : > { %s531_s12 = smov (!%p197_p4, %s453_s12), 1  ;;  %vm245_vm0 = vcmask 1041408   ;;  %v220_v6 = vld [vmem:[%s523_s1] sm:$0xf]  ;;  %vm241_vm1 = vcmask 293888   ;;  %vm271_vm2 = vcmask 7168  }
   0xd   : > { %s414_s16 = smul.u32 20, %s531_s12  ;;  %s399_s22 = sshll.u32 %s531_s12, 2  ;;  %vm273_vm3 = vcmask 15368  }
   0xe   : > { %s211_s25 = scalar_lea.vmem %s524_s2, %s399_s22  ;;  %s400_s26 = sshll.u32 %s531_s12, 3 }
   0xf   : > { %s204_s19 = scalar_lea.vmem %s522_s0, %s414_s16  ;;  %s218_s29 = scalar_lea.vmem %s525_s3, %s400_s26 }
  0x10   : > { %v225_v0 = vld [vmem:[%s204_s19 + $0x10] sm:$0x3]  ;;  %v413_v4 = vld [vmem:[%s204_s19 + $0x8] sm:$0xff]  ;;  %v412_v5 = vld [vmem:[%s204_s19] sm:$0xff] }
  0x11   : > { %v235_v1 = vunpack.c.l.b16 %v225_v0 }
  0x13   : > { %v238_v2 = vpack.c.b16 %v235_v1, %v235_v1 }
  0x15   : > { %v247_v3 = vsel %vm245_vm0, %v238_v2, 0 }
  0x16   : > { %254 = vmatpush.bf16.msra.mxu0 %v247_v3 }
  0x1a   : > { %255 = vmatpush.bf16.msra.mxu0 %v413_v4 }
  0x1e   : > { %256 = vmatpush.bf16.msra.mxu0 %v412_v5 }
  0x21   : > { %409 = vmatmul.msk.bf16.vlgmr.msra.gmra.mxu0 %vm241_vm1, %v220_v6 }
  0x9e   : > { %v258_v7 = vpop.f32.mrf.mxu0 }
  0x9f   : > { %v262_v8 = vpack.c.bf16 %v258_v7, %v258_v7  ;;  %264 = vadd.xlane.f32.xlu0 %v258_v7  ;;  %v267_v9 = vmul.f32 %v258_v7, %v258_v7 }
  0xa1   : > { %263 = vst [vmem:[%s211_s25] sm:$0xf] %v262_v8 }
  0xa6   : > { %v260_v10 = vpop.f32.mrf.mxu0 }
  0xa7   : > { %268 = vadd.xlane.f32.xlu0 %v267_v9 }
 0x112   : > { %v265_v11 = vpop.xlane.xlu0 %264 }
 0x113   : > { %272 = vst.msk [vmem:[%s218_s29] sm:$0xff] %vm271_vm2, %v265_v11 }
 0x11a   : > { %v269_v12 = vpop.xlane.xlu0 %268 }
 0x11b   : > { %274 = vst.msk [vmem:[%s218_s29] sm:$0xff] %vm273_vm3, %v269_v12 }
 0x11c PF: > { %s14_s14 = sadd.s32 1, %s461_s14   ;;  %s526_s12 = smov %s457_s13 }
 0x11d   : > { %p11_p5 = scmp.ge.s32.totalorder %s14_s14, 4   ;;  %s527_s13 = smov %s529_s15 }
 0x11f   :  { %13 = sbr.rel (!%p11_p5) target bundleno = 2 (0x2), region = 70 }

// kernel: _lambda_.6
= control target key start
LH: loop header
LB: loop body
LE: loop exit
PB: predicated region body
PF: predicated region fallthrough
CT: control target
= control target key end

     0   :  { %s447_s12 = smov 0   ;;  %s449_s13 = smov 0   ;;  %s486_s0 = inlined_call_operand.vmem [shape: bf16[2,4,128], index: 0, kind: input, shape index: {}]   ;;  %s487_s1 = inlined_call_operand.vmem [shape: bf16[8,4], index: 1, kind: input, shape index: {}]   ;;  %s488_s2 = inlined_call_operand.vmem [shape: bf16[2,8,128], index: 2, kind: output, shape index: {0}]   ;;  %s489_s3 = inlined_call_operand.vmem [shape: f32[2,1,8,2], index: 3, kind: output, shape index: {1}]  }
   0x1   :  { %s451_s14 = smov 0  }
   0x2 LB: > { %s26_s15 = sadd.s32 1, %s421_s13  ;;  %p372_p0 = scmp.ge.s32.totalorder %s425_s14, 1  ;;  %s425_s14 = sphi %s451_s14, %s14_s14   ;;  %s421_s13 = sphi %s449_s13, %s491_s13   ;;  %s417_s12 = sphi %s447_s12, %s490_s12  }
   0x3   : > { %p28_p1 = scmp.ge.s32.totalorder %s26_s15, 2  ;;  %p160_p2 = scmp.lt.s32.totalorder %s425_s14, 3 }
   0x5   : > { %s493_s15 = smov (%p28_p1, %s26_s15), 0  ;;  %p161_p3 = pnand %p372_p0, %p160_p2 }
   0x6   : > { %p195_p4 = scmp.lt.s32.totalorder (!%p161_p3), %s417_s12, 1 }
   0x7   : > { %164 = sbr.rel (%p161_p3) target bundleno = 271 (0x10f), region = 28 }
   0xc   : > { %s495_s12 = smov (!%p195_p4, %s417_s12), 1  ;;  %vm223_vm0 = vcmask 1041408   ;;  %v217_v2 = vld [vmem:[%s487_s1] sm:$0xf]  ;;  %vm219_vm1 = vcmask 31744   ;;  %vm249_vm2 = vcmask 7168  }
   0xd   : > { %s373_s16 = sshll.u32 %s495_s12, 1  ;;  %s374_s22 = sshll.u32 %s495_s12, 2  ;;  %vm251_vm3 = vcmask 15368  }
   0xe   : > { %s201_s19 = scalar_lea.vmem %s486_s0, %s373_s16  ;;  %s208_s25 = scalar_lea.vmem %s488_s2, %s374_s22 }
   0xf   : > { %v218_v0 = vld [vmem:[%s201_s19] sm:$0x3]  ;;  %s375_s26 = sshll.u32 %s495_s12, 3 }
  0x10   : > { %v225_v1 = vsel %vm223_vm0, %v218_v0, 0  ;;  %s215_s29 = scalar_lea.vmem %s489_s3, %s375_s26 }
  0x11   : > { %234 = vmatpush.bf16.msra.mxu0 %v225_v1 }
  0x14   : > { %376 = vmatmul.msk.bf16.vlgmr.msra.gmra.mxu0 %vm219_vm1, %v217_v2 }
  0x91   : > { %v236_v3 = vpop.f32.mrf.mxu0 }
  0x92   : > { %v240_v4 = vpack.c.bf16 %v236_v3, %v236_v3  ;;  %242 = vadd.xlane.f32.xlu0 %v236_v3  ;;  %v245_v5 = vmul.f32 %v236_v3, %v236_v3 }
  0x94   : > { %241 = vst [vmem:[%s208_s25] sm:$0xf] %v240_v4 }
  0x99   : > { %v238_v6 = vpop.f32.mrf.mxu0 }
  0x9a   : > { %246 = vadd.xlane.f32.xlu0 %v245_v5 }
 0x105   : > { %v243_v7 = vpop.xlane.xlu0 %242 }
 0x106   : > { %250 = vst.msk [vmem:[%s215_s29] sm:$0xff] %vm249_vm2, %v243_v7 }
 0x10d   : > { %v247_v8 = vpop.xlane.xlu0 %246 }
 0x10e   : > { %252 = vst.msk [vmem:[%s215_s29] sm:$0xff] %vm251_vm3, %v247_v8 }
 0x10f PF: > { %s14_s14 = sadd.s32 1, %s425_s14   ;;  %s490_s12 = smov %s421_s13 }
 0x110   : > { %p11_p5 = scmp.ge.s32.totalorder %s14_s14, 4   ;;  %s491_s13 = smov %s493_s15 }
 0x112   :  { %13 = sbr.rel (!%p11_p5) target bundleno = 2 (0x2), region = 70 }

// kernel: _lambda_.7
= control target key start
LH: loop header
LB: loop body
LE: loop exit
PB: predicated region body
PF: predicated region fallthrough
CT: control target
= control target key end

     0   :  { %s527_s21 = smov 0   ;;  %s529_s22 = smov 0   ;;  %s575_s0 = inlined_call_operand.vmem [shape: bf16[2,8,128], index: 0, kind: input, shape index: {}]   ;;  %s576_s1 = inlined_call_operand.vmem [shape: bf16[2,8,128], index: 1, kind: input, shape index: {}]   ;;  %s577_s2 = inlined_call_operand.vmem [shape: f32[1,8,1], index: 2, kind: input, shape index: {}]   ;;  %s578_s3 = inlined_call_operand.vmem [shape: f32[1,8,1], index: 3, kind: input, shape index: {}]   ;;  %s579_s4 = inlined_call_operand.vmem [shape: f32[1,8,1], index: 4, kind: input, shape index: {}]   ;;  %s580_s5 = inlined_call_operand.vmem [shape: f32[1,8,1], index: 5, kind: input, shape index: {}]   ;;  %s581_s6 = inlined_call_operand.vmem [shape: f32[2,8,128], index: 6, kind: output, shape index: {}]  }
   0x1   :  { %s531_s23 = smov 0  }
   0x2 LB: > { %s28_s24 = sadd.s32 1, %s485_s22  ;;  %p434_p0 = scmp.ge.s32.totalorder %s489_s23, 1  ;;  %s489_s23 = sphi %s531_s23, %s16_s23   ;;  %s485_s22 = sphi %s529_s22, %s583_s22   ;;  %s481_s21 = sphi %s527_s21, %s582_s21  }
   0x3   : > { %p30_p1 = scmp.ge.s32.totalorder %s28_s24, 2  ;;  %p244_p2 = scmp.lt.s32.totalorder %s489_s23, 3 }
   0x5   : > { %s585_s24 = smov (%p30_p1, %s28_s24), 0  ;;  %p245_p3 = pnand %p434_p0, %p244_p2 }
   0x6   : > { %p285_p4 = scmp.lt.s32.totalorder (!%p245_p3), %s481_s21, 1 }
   0x7   : > { %248 = sbr.rel (%p245_p3) target bundleno = 146 (0x92), region = 44 }
   0xc   : > { %v324_v0 = vld [vmem:[%s579_s4] sm:$0xff]  ;;  %v491_v2 = vmov 0   ;;  %s587_s21 = smov (!%p285_p4, %s481_s21), 1 }
   0xd   : > { %v310_v1 = vld [vmem:[%s577_s2] sm:$0xff]  ;;  %466 = vset.pattern.permute.xlu1 %v491_v2  ;;  %465 = vset.pattern.permute.xlu0 %v491_v2  ;;  %s435_s9 = sshll.u32 %s587_s21, 2  ;;  %s437_s16 = sshll.u32 %s587_s21, 3 }
   0xe   : > { %327 = vperm.xlu1 %466, %v324_v0   ;;  %313 = vperm.xlu0 %465, %v310_v1   ;;  %v332_v3 = vld [vmem:[%s580_s5] sm:$0xff]  ;;  %s291_s12 = scalar_lea.vmem %s575_s0, %s435_s9  ;;  %s298_s15 = scalar_lea.vmem %s576_s1, %s435_s9 }
   0xf   : > { %v317_v4 = vld [vmem:[%s578_s3] sm:$0xff]  ;;  %s305_s19 = scalar_lea.vmem %s581_s6, %s437_s16 }
  0x10   : > { %v306_v6 = vld [vmem:[%s291_s12] sm:$0xf] }
  0x11   : > { %v308_v8 = vld [vmem:[%s298_s15] sm:$0xf]  ;;  %v307_v9 = vunpack.c.l.bf16 %v306_v6 }
  0x12   : > { %v309_v10 = vunpack.c.l.bf16 %v308_v8 }
  0x16   : > { %335 = vperm.xlu1 %466, %v332_v3   ;;  %320 = vperm.xlu0 %465, %v317_v4  }
  0x80   : > { %v314_v5 = vpop.permute.xlu0 %313  ;;  %v328_v7 = vpop.permute.xlu1 %327 }
  0x81   : > { %v316_v11 = vmul.f32 %v314_v5, %v307_v9  ;;  %v330_v13 = vmul.f32 %v328_v7, %v309_v10 }
  0x88   : > { %v321_v12 = vpop.permute.xlu0 %320  ;;  %v336_v16 = vpop.permute.xlu1 %335 }
  0x89   : > { %v323_v14 = vadd.f32 %v321_v12, %v316_v11 }
  0x8b   : > { %v331_v15 = vadd.f32 %v330_v13, %v323_v14 }
  0x8d   : > { %v338_v17 = vadd.f32 %v336_v16, %v331_v15 }
  0x8f   : > { %v339_v18 = vmax.f32 %v338_v17, 0.0 }
  0x91   : > { %340 = vst [vmem:[%s305_s19] sm:$0xff] %v339_v18 }
  0x92 PF: > { %s16_s23 = sadd.s32 1, %s489_s23   ;;  %s582_s21 = smov %s485_s22 }
  0x93   : > { %p13_p5 = scmp.ge.s32.totalorder %s16_s23, 4   ;;  %s583_s22 = smov %s585_s24 }
  0x95   :  { %15 = sbr.rel (!%p13_p5) target bundleno = 2 (0x2), region = 77 }

</bundles_post_ra>
